<compile_context>
chip_gen: v5e
topology: v5e:2x2
jax: 0.10.0
libtpu: 0.0.40
codegen_flags: <defaults>
</compile_context>

<pallas_src>
import jax
import jax.numpy as jnp
from jax import lax
from jax.experimental import pallas as pl
from jax.experimental.pallas import tpu as pltpu


_TILE_ROWS_MAX = 8192  # rows per grid step; multiple of 128, VMEM-safe on v5e/v6e/v7x


def _round_up(x, m):
    return ((x + m - 1) // m) * m


def _gate_kernel(x_ref, w_ref, b_ref, out_ref):
    # x_ref:   (TM, C) tile of flattened activations (VMEM)
    # w_ref:   (1, C)  nn.Linear(in_dim, 1) weight row (VMEM, resident)
    # b_ref:   (1, 1)  nn.Linear bias (SMEM scalar)
    # out_ref: (1, TM) sigmoid(x @ W^T + b) for this tile, lane-dense.
    #
    # Contraction: w (1,C) . x (TM,C) over C -> (1, TM).  x (the big operand)
    # is contracted on its minor dim (A.B^T form); result lands with TM on
    # the lane axis so the store is an unmasked full-width vst.  Accumulation
    # is f32 regardless of the input dtype.
    logits_t = lax.dot_general(
        w_ref[...], x_ref[...],
        dimension_numbers=(((1,), (1,)), ((), ())),
        preferred_element_type=jnp.float32,
    )
    z = logits_t + b_ref[0, 0]                       # scalar bias from SMEM
    # sigmoid(z) = 1 / (1 + exp(-z)); exp -> EUP, exact reciprocal for parity.
    out_ref[...] = pl.reciprocal(1.0 + jnp.exp(-z))


def elementwise_gate(x, weight, bias, *, input_dtype=None,
                     tile_rows=_TILE_ROWS_MAX):
    """Pallas forward of ElementwiseGateLayer.

    Args:
      x:           (B, N, C) float32  (nb_examples, nb_nodes, in_dim)
      weight:      (1, C)    float32  (PyTorch nn.Linear(in_dim, 1) weight)
      bias:        (1,)      float32
      input_dtype: optional dtype for the HBM read of x / weight (e.g.
                   jnp.bfloat16 halves the memory-bound traffic); compute and
                   output remain float32.  None keeps the input dtype.
      tile_rows:   max rows per grid step (rounded to a multiple of 128).
    Returns:
      gate_weights: (B, N, 1) float32
    """
    B, N, C = x.shape
    M = B * N

    x2 = x.reshape(M, C)                       # fuse batch + nodes
    w_row = weight.reshape(1, C)
    if input_dtype is not None:
        x2 = x2.astype(input_dtype)
        w_row = w_row.astype(input_dtype)
    b_arr = bias.reshape(1, 1).astype(jnp.float32)

    # Tile rows: multiple of 128 so every (1, TM) output block is a full-lane
    # unmasked store; cap so the lane-padded, double-buffered x tile fits the
    # default scoped VMEM on every TPU generation.
    tm = min(_round_up(tile_rows, 128), _round_up(M, 128))
    m_pad = _round_up(M, tm)
    if m_pad != M:
        # Zero rows produce sigmoid(bias) in the padded tail; sliced off below.
        x2 = jnp.pad(x2, ((0, m_pad - M), (0, 0)))

    gate_t = pl.pallas_call(
        _gate_kernel,
        out_shape=jax.ShapeDtypeStruct((1, m_pad), jnp.float32),
        grid=(m_pad // tm,),
        in_specs=[
            pl.BlockSpec((tm, C), lambda i: (i, 0)),                 # stream x
            pl.BlockSpec((1, C), lambda i: (0, 0)),                  # resident w
            pl.BlockSpec(memory_space=pltpu.MemorySpace.SMEM),       # scalar bias
        ],
        out_specs=pl.BlockSpec((1, tm), lambda i: (0, i)),           # lane-dense
        compiler_params=pltpu.CompilerParams(
            dimension_semantics=("parallel",)),                      # v7x 2-TC split
    )(x2, w_row, b_arr)

    # (1, m_pad) -> (B, N, 1): drop padding, pure layout fixup on the HBM side.
    return gate_t[0, :M].reshape(B, N, 1)


def _reference(x, weight, bias):
    # Pure-JAX reference mirroring the PyTorch forward exactly (f32).
    B, N, C = x.shape
    logits = x.reshape(-1, C) @ weight.T + bias          # (B*N, 1)
    return jax.nn.sigmoid(logits).reshape(B, N, 1)


if __name__ == "__main__":
    key = jax.random.PRNGKey(0)
    kx, kw, kb, kx2 = jax.random.split(key, 4)

    C = 32  # in_dim (id_dim)
    bound = 1.0 / jnp.sqrt(C)
    # Deterministic "nn.Linear(in_dim, 1)" parameters (synthetic, not a checkpoint).
    weight = jax.random.uniform(kw, (1, C), minval=-bound, maxval=bound,
                                dtype=jnp.float32)
    bias = jax.random.uniform(kb, (1,), minval=-bound, maxval=bound,
                              dtype=jnp.float32)

    # 1) Model-natural small shape (B=2 examples, N=8 nodes): single grid step.
    B, N = 2, 8
    x_small = jax.random.normal(kx, (B, N, C), dtype=jnp.float32)
    gate = elementwise_gate(x_small, weight, bias)
    jax.block_until_ready(gate)
    ref = _reference(x_small, weight, bias)
    assert gate.shape == (B, N, 1)
    assert jnp.allclose(gate, ref, atol=1e-5, rtol=1e-5)

    # 2) Larger shape exercising the row-tiled multi-step grid (f32, exact).
    B2, N2 = 2, 8192                      # M = 16384 -> 2 tiles of 8192 rows
    x_big = jax.random.normal(kx2, (B2, N2, C), dtype=jnp.float32)
    gate_big = elementwise_gate(x_big, weight, bias)
    jax.block_until_ready(gate_big)
    ref_big = _reference(x_big, weight, bias)
    assert gate_big.shape == (B2, N2, 1)
    assert jnp.allclose(gate_big, ref_big, atol=1e-5, rtol=1e-5)

    # 3) bf16 HBM-read path (halves the memory-bound traffic); f32 output.
    gate_bf16 = elementwise_gate(x_big, weight, bias, input_dtype=jnp.bfloat16)
    jax.block_until_ready(gate_bf16)
    assert gate_bf16.dtype == jnp.float32
    assert jnp.allclose(gate_bf16, ref_big, atol=5e-2, rtol=0)

    print("KERNEL_OK")
</pallas_src>

<mosaic_0001>
module attributes {stable_mosaic.version = 11 : i64} {
  func.func @_gate_kernel(%arg0: i32, %arg1: memref<128x32xf32, #tpu.memory_space<vmem>>, %arg2: memref<1x32xf32, #tpu.memory_space<vmem>>, %arg3: memref<1x1xf32, #tpu.memory_space<smem>>, %arg4: memref<1x128xf32, #tpu.memory_space<vmem>>) attributes {dimension_semantics = [#tpu.dimension_semantics<parallel>], iteration_bounds = array<i64: 1>, scalar_prefetch = 0 : i64, scratch_operands = 0 : i64, tpu.core_type = #tpu.core_type<tc>, window_params = [{transform_indices = @transform_0, window_bounds = array<i64: 128, 32>}, {pipeline_mode = #tpu.pipeline_mode<synchronous>, transform_indices = @transform_1, window_bounds = array<i64: 1, 32>}, {transform_indices = @transform_2, window_bounds = array<i64: 1, 1>}, {transform_indices = @transform_3, window_bounds = array<i64: 1, 128>}]} {
    %c0 = arith.constant 0 : index
    %c0_0 = arith.constant 0 : index
    %0 = vector.load %arg2[%c0, %c0_0] : memref<1x32xf32, #tpu.memory_space<vmem>>, vector<1x32xf32>
    %c0_1 = arith.constant 0 : index
    %c0_2 = arith.constant 0 : index
    %1 = vector.load %arg1[%c0_1, %c0_2] : memref<128x32xf32, #tpu.memory_space<vmem>>, vector<128x32xf32>
    %cst = arith.constant dense<0.000000e+00> : vector<1x128xf32>
    %2 = tpu.matmul %0, %1, %cst {dimension_numbers = #tpu.dot_dimension_numbers<[1], [1], [0], [0], [0, 0, 1, 0], [], []>} : vector<1x32xf32>, vector<128x32xf32>, vector<1x128xf32> -> vector<1x128xf32>
    %c0_3 = arith.constant 0 : index
    %c0_4 = arith.constant 0 : index
    %3 = memref.load %arg3[%c0_3, %c0_4] : memref<1x1xf32, #tpu.memory_space<smem>>
    %4 = vector.broadcast %3 : f32 to vector<1x128xf32>
    %5 = arith.addf %2, %4 : vector<1x128xf32>
    %cst_5 = arith.constant 0.000000e+00 : f32
    %6 = vector.broadcast %cst_5 : f32 to vector<1x128xf32>
    %7 = arith.subf %6, %5 : vector<1x128xf32>
    %8 = math.exp %7 : vector<1x128xf32>
    %cst_6 = arith.constant 1.000000e+00 : f32
    %9 = vector.broadcast %cst_6 : f32 to vector<1x128xf32>
    %10 = arith.addf %9, %8 : vector<1x128xf32>
    %11 = tpu.reciprocal %10 : vector<1x128xf32> -> vector<1x128xf32>
    %c0_7 = arith.constant 0 : index
    %c0_8 = arith.constant 0 : index
    %12 = vector.load %arg4[%c0_7, %c0_8] : memref<1x128xf32, #tpu.memory_space<vmem>>, vector<1x128xf32>
    tpu.vector_store %arg4[%c0_7, %c0_8], %11 {strides = array<i32>} : memref<1x128xf32, #tpu.memory_space<vmem>>, vector<1x128xf32>,
    return
  }
  func.func @transform_0(%arg0: i32) -> (i32, i32) {
    %c0_i32 = arith.constant 0 : i32
    %c0_i32_0 = arith.constant 0 : i32
    return %arg0, %c0_i32 : i32, i32
  }
  func.func @transform_1(%arg0: i32) -> (i32, i32) {
    %c0_i32 = arith.constant 0 : i32
    %c0_i32_0 = arith.constant 0 : i32
    %c0_i32_1 = arith.constant 0 : i32
    return %c0_i32, %c0_i32_0 : i32, i32
  }
  func.func @transform_2(%arg0: i32) -> (i32, i32) {
    %c0_i32 = arith.constant 0 : i32
    %c0_i32_0 = arith.constant 0 : i32
    %c0_i32_1 = arith.constant 0 : i32
    return %c0_i32, %c0_i32_0 : i32, i32
  }
  func.func @transform_3(%arg0: i32) -> (i32, i32) {
    %c0_i32 = arith.constant 0 : i32
    %c0_i32_0 = arith.constant 0 : i32
    return %c0_i32, %arg0 : i32, i32
  }
}

</mosaic_0001>

<bundles_post_ra>
// kernel: tpu_custom_call.1
= control target key start
LH: loop header
LB: loop body
LE: loop exit
PB: predicated region body
PF: predicated region fallthrough
CT: control target
= control target key end

     0   :  { %vm35_vm0 = vcmask 261120   ;;  %s285_s0 = inlined_call_operand.vmem [shape: f32[128,32], index: 0, kind: input, shape index: {}]   ;;  %s286_s1 = inlined_call_operand.vmem [shape: f32[1,32], index: 1, kind: input, shape index: {}]   ;;  %s287_s2 = inlined_call_operand.<no memory space> [shape: f32[1,1], index: 2, kind: input, shape index: {}]   ;;  %s288_s3 = inlined_call_operand.hbm [shape: f32[1,128], index: 3, kind: output, shape index: {}]  }
   0x1   :  { %v32_v0 = vld [vmem:[%s285_s0 + $0x78] sm:$0xff]  ;;  %v31_v1 = vld [vmem:[%s285_s0 + $0x70] sm:$0xff] }
   0x2   :  { %142 = vmatpush.xpose.msk.msra.mxu0 %vm35_vm0, %v32_v0 }
   0x3   :  { %9 = vsyncpa [#allocation4], 0  ;;  %v30_v2 = vld [vmem:[%s285_s0 + $0x68] sm:$0xff]  ;;  %v29_v3 = vld [vmem:[%s285_s0 + $0x60] sm:$0xff]  ;;  %v34_v17 = vstv %s287_s2  ;;  %s133_s2 = sshll.u32 %s288_s3, 4  ;;  %s134_s2 = int_to_ptr.hbm [resolvable:$true] %s133_s2 }
   0x4   :  { %v28_v4 = vld [vmem:[%s285_s0 + $0x58] sm:$0xff]  ;;  %v27_v5 = vld [vmem:[%s285_s0 + $0x50] sm:$0xff]  ;;  %v26_v6 = vld [vmem:[%s285_s0 + $0x48] sm:$0xff] }
   0x5   :  { %v25_v7 = vld [vmem:[%s285_s0 + $0x40] sm:$0xff]  ;;  %v24_v8 = vld [vmem:[%s285_s0 + $0x38] sm:$0xff]  ;;  %v23_v9 = vld [vmem:[%s285_s0 + $0x30] sm:$0xff] }
   0x6   :  { %143 = vmatpush.xpose.msk.msra.mxu0 %vm35_vm0, %v31_v1  ;;  %v22_v10 = vld [vmem:[%s285_s0 + $0x28] sm:$0xff]  ;;  %v21_v11 = vld [vmem:[%s285_s0 + $0x20] sm:$0xff]  ;;  %v20_v12 = vld [vmem:[%s285_s0 + $0x18] sm:$0xff] }
   0x7   :  { %v19_v13 = vld [vmem:[%s285_s0 + $0x10] sm:$0xff]  ;;  %v18_v14 = vld [vmem:[%s285_s0 + $0x8] sm:$0xff]  ;;  %v17_v15 = vld [vmem:[%s285_s0] sm:$0xff]  ;;  %s190_s0 = smov [#allocation3]  }
   0x8   :  { %v16_v16 = vld [vmem:[%s286_s1] sm:$0x1]  ;;  %s131_s1 = sshll.u32 %s190_s0, 4  ;;  %s132_s1 = int_to_ptr.vmem [resolvable:$true] %s131_s1 }
   0xa   :  { %144 = vmatpush.xpose.msk.msra.mxu0 %vm35_vm0, %v30_v2 }
   0xe   :  { %145 = vmatpush.xpose.msk.msra.mxu0 %vm35_vm0, %v29_v3 }
  0x12   :  { %146 = vmatpush.xpose.msk.msra.mxu0 %vm35_vm0, %v28_v4 }
  0x16   :  { %147 = vmatpush.xpose.msk.msra.mxu0 %vm35_vm0, %v27_v5 }
  0x1a   :  { %148 = vmatpush.xpose.msk.msra.mxu0 %vm35_vm0, %v26_v6 }
  0x1e   :  { %149 = vmatpush.xpose.msk.msra.mxu0 %vm35_vm0, %v25_v7 }
  0x22   :  { %150 = vmatpush.xpose.msk.msra.mxu0 %vm35_vm0, %v24_v8 }
  0x26   :  { %151 = vmatpush.xpose.msk.msra.mxu0 %vm35_vm0, %v23_v9 }
  0x2a   :  { %152 = vmatpush.xpose.msk.msra.mxu0 %vm35_vm0, %v22_v10 }
  0x2e   :  { %153 = vmatpush.xpose.msk.msra.mxu0 %vm35_vm0, %v21_v11 }
  0x32   :  { %154 = vmatpush.xpose.msk.msra.mxu0 %vm35_vm0, %v20_v12 }
  0x36   :  { %155 = vmatpush.xpose.msk.msra.mxu0 %vm35_vm0, %v19_v13 }
  0x3a   :  { %156 = vmatpush.xpose.msk.msra.mxu0 %vm35_vm0, %v18_v14 }
  0x3e   :  { %157 = vmatpush.xpose.msk.msra.mxu0 %vm35_vm0, %v17_v15 }
  0x41   :  { %158 = vmatmul.msk.f32.vlgmr.msra.gmra.mxu0 %vm35_vm0, %v16_v16 }
  0xbe   :  { %v104_v18 = vpop.f32.mrf.mxu0 }
  0xbf   :  { %v105_v19 = vadd.f32 %v104_v18, %v34_v17 }
  0xc1   :  { %v107_v20 = vsub.f32 0.0, %v105_v19 }
  0xc3   :  { %v108_v21 = vmul.f32 1.442695, %v107_v20 }
  0xc5   :  { %160 = vpow2.f32 %v108_v21 }
  0xcb   :  { %v161_v22 = vpop.eup %160 }
  0xcc   :  { %v110_v23 = vadd.f32 1.0, %v161_v22 }
  0xce   :  { %162 = vrcp.f32 %v110_v23  ;;  %v122_v27 = vand.u32 2147483648, %v110_v23  ;;  %v120_v29 = vand.u32 2147483647, %v110_v23  ;;  %vm116_vm2 = vweird.f32 %v110_v23 }
  0xd0   :  { %v123_v31 = vor.u32 1.1754944e-38, %v122_v27  ;;  %vm121_vm4 = vcmp.eq.f32.partialorder %v120_v29, 8.507059e+37 }
  0xd4   :  { %v163_v24 = vpop.eup %162 }
  0xd5   :  { %v112_v25 = vmul.f32 %v163_v24, %v110_v23  ;;  %vm117_vm1 = vweird.f32 %v163_v24 }
  0xd6   :  { %vm118_vm3 = vmor %vm116_vm2, %vm117_vm1 }
  0xd7   :  { %v113_v26 = vsub.f32 1.0, %v112_v25 }
  0xd9   :  { %v114_v28 = vmul.f32 %v163_v24, %v113_v26 }
  0xdb   :  { %v115_v30 = vadd.f32 %v163_v24, %v114_v28 }
  0xdd   :  { %v119_v32 = vsel %vm118_vm3, %v163_v24, %v115_v30 }
  0xde   :  { %v124_v33 = vsel %vm121_vm4, %v123_v31, %v119_v32 }
  0xdf   :  { %125 = vst [vmem:[#allocation3] sm:$0x1] %v124_v33 }
  0xe0   :  { %136 = dma.vmem_to_hbm [thread:$0]  %s132_s1, 16, %s134_s2, [#allocation4]  }
  0xe1   :  { %188 = dma.done.wait [#allocation4], 16  }
  0xe2   :  { %189 = vsyncadd [#allocation4], 4294967280 }
  0xe3   :  { %141 = vsyncpa [#allocation4], 1 }

</bundles_post_ra>
